<compile_context>
chip_gen: v6e
topology: v6e:2x2x1
jax: 0.10.0
libtpu: 0.0.40
codegen_flags: <defaults>
</compile_context>

<pallas_src>
import functools
import math

import jax
import jax.numpy as jnp
from jax.experimental import pallas as pl
from jax.experimental.pallas import tpu as pltpu

# ---- hyper-parameters (match the PyTorch spec) ------------------------------
hidden_size = 768
mlp_size = 3072
num_heads = 12
d_head = 64                      # d_k = d_q = d_v
num_layers = 3
LN_EPS = 1e-6
DROP_PATH_PROB = 0.2
DROPOUT_PROB = 0.3


def _gelu_tanh(x):
    # TODO(synk): torch nn.GELU() uses the exact erf form; the tanh approximation
    # (max abs diff ~1e-3) is used for portable EUP lowering inside the kernel.
    c = math.sqrt(2.0 / math.pi)
    return 0.5 * x * (1.0 + jnp.tanh(c * (x + 0.044715 * x * x * x)))


def _pick_tile(dim, preferred):
    return preferred if dim % preferred == 0 else dim


# -----------------------------------------------------------------------------
# Linear:  y = x @ W + b           grid = (N tiles, K tiles), K accumulated
# -----------------------------------------------------------------------------
def _linear_kernel(x_ref, w_ref, b_ref, o_ref, acc_ref):
    k = pl.program_id(1)

    @pl.when(k == 0)
    def _():
        acc_ref[...] = jnp.zeros_like(acc_ref)

    acc_ref[...] += jnp.dot(x_ref[...], w_ref[...],
                            preferred_element_type=jnp.float32)

    @pl.when(k == pl.num_programs(1) - 1)
    def _():
        o_ref[...] = (acc_ref[...] + b_ref[...].astype(jnp.float32)
                      ).astype(o_ref.dtype)


def linear_pallas(x, w, b, *, tn=256, tk=256):
    M, K = x.shape
    _, N = w.shape
    tk = _pick_tile(K, tk)
    tn = _pick_tile(N, tn)
    return pl.pallas_call(
        _linear_kernel,
        out_shape=jax.ShapeDtypeStruct((M, N), x.dtype),
        grid=(N // tn, K // tk),
        in_specs=[
            pl.BlockSpec((M, tk), lambda j, k: (0, k)),
            pl.BlockSpec((tk, tn), lambda j, k: (k, j)),
            pl.BlockSpec((1, tn), lambda j, k: (0, j)),
        ],
        out_specs=pl.BlockSpec((M, tn), lambda j, k: (0, j)),
        scratch_shapes=[pltpu.VMEM((M, tn), jnp.float32)],
        compiler_params=pltpu.CompilerParams(
            dimension_semantics=("parallel", "arbitrary")),
    )(x, w, b.reshape(1, N))


# -----------------------------------------------------------------------------
# Linear + GELU + dropout (fc1 of the MLP, dropout mask fused into epilogue)
# -----------------------------------------------------------------------------
def _linear_gelu_dropout_kernel(x_ref, w_ref, b_ref, keep_ref, o_ref, acc_ref):
    k = pl.program_id(1)

    @pl.when(k == 0)
    def _():
        acc_ref[...] = jnp.zeros_like(acc_ref)

    acc_ref[...] += jnp.dot(x_ref[...], w_ref[...],
                            preferred_element_type=jnp.float32)

    @pl.when(k == pl.num_programs(1) - 1)
    def _():
        h = acc_ref[...] + b_ref[...].astype(jnp.float32)
        h = _gelu_tanh(h)
        h = h * keep_ref[...].astype(jnp.float32)
        o_ref[...] = h.astype(o_ref.dtype)


def linear_gelu_dropout_pallas(x, w, b, keep, *, tn=256, tk=256):
    M, K = x.shape
    _, N = w.shape
    tk = _pick_tile(K, tk)
    tn = _pick_tile(N, tn)
    return pl.pallas_call(
        _linear_gelu_dropout_kernel,
        out_shape=jax.ShapeDtypeStruct((M, N), x.dtype),
        grid=(N // tn, K // tk),
        in_specs=[
            pl.BlockSpec((M, tk), lambda j, k: (0, k)),
            pl.BlockSpec((tk, tn), lambda j, k: (k, j)),
            pl.BlockSpec((1, tn), lambda j, k: (0, j)),
            pl.BlockSpec((M, tn), lambda j, k: (0, j)),
        ],
        out_specs=pl.BlockSpec((M, tn), lambda j, k: (0, j)),
        scratch_shapes=[pltpu.VMEM((M, tn), jnp.float32)],
        compiler_params=pltpu.CompilerParams(
            dimension_semantics=("parallel", "arbitrary")),
    )(x, w, b.reshape(1, N), keep)


# -----------------------------------------------------------------------------
# Attention core: per (batch, head) softmax(q k^T / sqrt(d)) v
# -----------------------------------------------------------------------------
def _attention_kernel(q_ref, k_ref, v_ref, o_ref, *, scale):
    q = q_ref[0].astype(jnp.float32)          # (S, d)
    k = k_ref[0].astype(jnp.float32)          # (S, d)
    v = v_ref[0].astype(jnp.float32)          # (S, d)
    s = jax.lax.dot_general(q, k, (((1,), (1,)), ((), ())),
                            preferred_element_type=jnp.float32) * scale
    s = s - jnp.max(s, axis=-1, keepdims=True)
    p = jnp.exp(s)
    p = p / jnp.sum(p, axis=-1, keepdims=True)
    o_ref[0] = jnp.dot(p, v, preferred_element_type=jnp.float32).astype(o_ref.dtype)


def attention_pallas(q, k, v):
    B, S, H = q.shape
    assert H == num_heads * d_head

    def split(t):
        return (t.reshape(B, S, num_heads, d_head)
                 .transpose(0, 2, 1, 3)
                 .reshape(B * num_heads, S, d_head))

    qh, kh, vh = split(q), split(k), split(v)
    BH = B * num_heads
    ctx = pl.pallas_call(
        functools.partial(_attention_kernel, scale=1.0 / math.sqrt(d_head)),
        out_shape=jax.ShapeDtypeStruct((BH, S, d_head), q.dtype),
        grid=(BH,),
        in_specs=[
            pl.BlockSpec((1, S, d_head), lambda i: (i, 0, 0)),
            pl.BlockSpec((1, S, d_head), lambda i: (i, 0, 0)),
            pl.BlockSpec((1, S, d_head), lambda i: (i, 0, 0)),
        ],
        out_specs=pl.BlockSpec((1, S, d_head), lambda i: (i, 0, 0)),
        compiler_params=pltpu.CompilerParams(dimension_semantics=("parallel",)),
    )(qh, kh, vh)
    return (ctx.reshape(B, num_heads, S, d_head)
               .transpose(0, 2, 1, 3)
               .reshape(B, S, H))


# -----------------------------------------------------------------------------
# Plain LayerNorm over the last axis, row-tiled
# -----------------------------------------------------------------------------
def _ln_kernel(x_ref, g_ref, b_ref, o_ref, *, eps):
    y = x_ref[...].astype(jnp.float32)
    mean = jnp.mean(y, axis=-1, keepdims=True)
    yc = y - mean
    var = jnp.mean(yc * yc, axis=-1, keepdims=True)
    inv = jax.lax.rsqrt(var + eps)
    o_ref[...] = (yc * inv * g_ref[...].astype(jnp.float32)
                  + b_ref[...].astype(jnp.float32)).astype(o_ref.dtype)


def layernorm_pallas(x2d, gamma, beta, *, eps=LN_EPS):
    R, H = x2d.shape
    tr = 8 if R % 8 == 0 else R
    return pl.pallas_call(
        functools.partial(_ln_kernel, eps=eps),
        out_shape=jax.ShapeDtypeStruct((R, H), x2d.dtype),
        grid=(R // tr,),
        in_specs=[
            pl.BlockSpec((tr, H), lambda i: (i, 0)),
            pl.BlockSpec((1, H), lambda i: (0, 0)),
            pl.BlockSpec((1, H), lambda i: (0, 0)),
        ],
        out_specs=pl.BlockSpec((tr, H), lambda i: (i, 0)),
        compiler_params=pltpu.CompilerParams(dimension_semantics=("parallel",)),
    )(x2d, gamma.reshape(1, H), beta.reshape(1, H))


# -----------------------------------------------------------------------------
# Fused DropPath + residual + LayerNorm:
#   out[b] = LN(res[b] + x[b] * (1 + dp_scale[b]))
# dp_scale[b] = mask_b / keep_prob during training, 1.0 in eval — it lives in
# SMEM via scalar prefetch, so the per-sample scale is a free scalar multiply.
# -----------------------------------------------------------------------------
def _res_dp_ln_kernel(dp_ref, res_ref, x_ref, g_ref, b_ref, o_ref, *, eps):
    bidx = pl.program_id(0)
    mult = 1.0 + dp_ref[bidx]
    y = res_ref[...].astype(jnp.float32) + x_ref[...].astype(jnp.float32) * mult
    mean = jnp.mean(y, axis=-1, keepdims=True)
    yc = y - mean
    var = jnp.mean(yc * yc, axis=-1, keepdims=True)
    inv = jax.lax.rsqrt(var + eps)
    o_ref[...] = (yc * inv * g_ref[...].astype(jnp.float32)
                  + b_ref[...].astype(jnp.float32)).astype(o_ref.dtype)


def residual_droppath_ln_pallas(res, x, dp_scale, gamma, beta, *, eps=LN_EPS):
    B, S, H = x.shape
    return pl.pallas_call(
        functools.partial(_res_dp_ln_kernel, eps=eps),
        out_shape=jax.ShapeDtypeStruct((B, S, H), x.dtype),
        grid_spec=pltpu.PrefetchScalarGridSpec(
            num_scalar_prefetch=1,
            grid=(B,),
            in_specs=[
                pl.BlockSpec((1, S, H), lambda b, dp: (b, 0, 0)),
                pl.BlockSpec((1, S, H), lambda b, dp: (b, 0, 0)),
                pl.BlockSpec((1, H), lambda b, dp: (0, 0)),
                pl.BlockSpec((1, H), lambda b, dp: (0, 0)),
            ],
            out_specs=pl.BlockSpec((1, S, H), lambda b, dp: (b, 0, 0)),
        ),
        compiler_params=pltpu.CompilerParams(dimension_semantics=("parallel",)),
    )(dp_scale.astype(jnp.float32), res, x, gamma.reshape(1, H), beta.reshape(1, H))


# -----------------------------------------------------------------------------
# Parameters / stochastic tensors / forward passes
# -----------------------------------------------------------------------------
def init_encoder_params(key):
    def dense(k, shape):
        return 0.02 * jax.random.normal(k, shape, jnp.float32)

    layers = []
    for _ in range(num_layers):
        key, *ks = jax.random.split(key, 15)
        layers.append(dict(
            wq=dense(ks[0], (hidden_size, hidden_size)), bq=dense(ks[1], (hidden_size,)),
            wk=dense(ks[2], (hidden_size, hidden_size)), bk=dense(ks[3], (hidden_size,)),
            wv=dense(ks[4], (hidden_size, hidden_size)), bv=dense(ks[5], (hidden_size,)),
            ln_attn_g=1.0 + 0.1 * jax.random.normal(ks[6], (hidden_size,), jnp.float32),
            ln_attn_b=0.1 * jax.random.normal(ks[7], (hidden_size,), jnp.float32),
            w1=dense(ks[8], (hidden_size, mlp_size)), b1=dense(ks[9], (mlp_size,)),
            w2=dense(ks[10], (mlp_size, hidden_size)), b2=dense(ks[11], (hidden_size,)),
            ln_mlp_g=1.0 + 0.1 * jax.random.normal(ks[12], (hidden_size,), jnp.float32),
            ln_mlp_b=0.1 * jax.random.normal(ks[13], (hidden_size,), jnp.float32),
        ))
    key, kg, kb = jax.random.split(key, 3)
    return dict(
        layers=layers,
        ln_g=1.0 + 0.1 * jax.random.normal(kg, (hidden_size,), jnp.float32),
        ln_b=0.1 * jax.random.normal(kb, (hidden_size,), jnp.float32),
    )


def make_stochastic(key, batch, rows, *, training):
    """Materialize per-call DropPath scales and dropout keep-masks."""
    keep_path = 1.0 - DROP_PATH_PROB
    keep_drop = 1.0 - DROPOUT_PROB
    dp_attn, dp_mlp, drop_keep = [], [], []
    for _ in range(num_layers):
        if training:
            key, k1, k2, k3 = jax.random.split(key, 4)
            dp_attn.append(jnp.floor(
                keep_path + jax.random.uniform(k1, (batch,), jnp.float32)) / keep_path)
            dp_mlp.append(jnp.floor(
                keep_path + jax.random.uniform(k2, (batch,), jnp.float32)) / keep_path)
            drop_keep.append(
                (jax.random.uniform(k3, (rows, mlp_size), jnp.float32) >= DROPOUT_PROB
                 ).astype(jnp.float32) / keep_drop)
        else:
            dp_attn.append(jnp.ones((batch,), jnp.float32))
            dp_mlp.append(jnp.ones((batch,), jnp.float32))
            drop_keep.append(jnp.ones((rows, mlp_size), jnp.float32))
    return dict(dp_attn=dp_attn, dp_mlp=dp_mlp, drop_keep=drop_keep)


def encoder_forward_pallas(params, x, stoch):
    B, S, H = x.shape
    for l, p in enumerate(params["layers"]):
        # --- MultiHeadAttention block ---------------------------------------
        res = x
        x2d = x.reshape(B * S, H)
        q = linear_pallas(x2d, p["wq"], p["bq"])
        k = linear_pallas(x2d, p["wk"], p["bk"])
        v = linear_pallas(x2d, p["wv"], p["bv"])
        ctx = attention_pallas(q.reshape(B, S, H), k.reshape(B, S, H),
                               v.reshape(B, S, H))
        x = residual_droppath_ln_pallas(res, ctx, stoch["dp_attn"][l],
                                        p["ln_attn_g"], p["ln_attn_b"])
        # --- MLP block --------------------------------------------------------
        res = x
        h = layernorm_pallas(x.reshape(B * S, H), p["ln_mlp_g"], p["ln_mlp_b"])
        h = linear_gelu_dropout_pallas(h, p["w1"], p["b1"], stoch["drop_keep"][l])
        h = linear_pallas(h, p["w2"], p["b2"])
        x = residual_droppath_ln_pallas(res, h.reshape(B, S, H),
                                        stoch["dp_mlp"][l],
                                        p["ln_mlp_g"], p["ln_mlp_b"])
    out = layernorm_pallas(x.reshape(B * S, H), params["ln_g"], params["ln_b"])
    return out.reshape(B, S, H)


class Encoder:
    """Pallas-backed equivalent of the PyTorch Encoder module."""

    def __init__(self, key):
        self.params = init_encoder_params(key)
        self.training = False

    def __call__(self, x, *, key=None):
        B, S, _ = x.shape
        if self.training and key is None:
            raise ValueError("training mode requires an explicit PRNG key")
        stoch = make_stochastic(key if key is not None else jax.random.PRNGKey(0),
                                B, B * S, training=self.training)
        return encoder_forward_pallas(self.params, x, stoch)


# --------------------------- pure-JAX reference -------------------------------
def _layer_norm_ref(x, g, b):
    mean = jnp.mean(x, axis=-1, keepdims=True)
    xc = x - mean
    var = jnp.mean(xc * xc, axis=-1, keepdims=True)
    return xc / jnp.sqrt(var + LN_EPS) * g + b


def encoder_forward_ref(params, x, stoch):
    hp = jax.lax.Precision.HIGHEST
    B, S, H = x.shape
    for l, p in enumerate(params["layers"]):
        res = x
        x2d = x.reshape(B * S, H)
        q = jnp.dot(x2d, p["wq"], precision=hp) + p["bq"]
        k = jnp.dot(x2d, p["wk"], precision=hp) + p["bk"]
        v = jnp.dot(x2d, p["wv"], precision=hp) + p["bv"]

        def heads(t):
            return t.reshape(B, S, num_heads, d_head).transpose(0, 2, 1, 3)

        qh, kh, vh = heads(q), heads(k), heads(v)
        attn = jnp.einsum("bhqd,bhkd->bhqk", qh, kh, precision=hp) / math.sqrt(d_head)
        attn = jax.nn.softmax(attn, axis=-1)
        ctx = jnp.einsum("bhqk,bhkd->bhqd", attn, vh, precision=hp)
        ctx = ctx.transpose(0, 2, 1, 3).reshape(B, S, H)
        ctx = ctx + ctx * stoch["dp_attn"][l][:, None, None]
        x = _layer_norm_ref(res + ctx, p["ln_attn_g"], p["ln_attn_b"])

        res = x
        h = _layer_norm_ref(x, p["ln_mlp_g"], p["ln_mlp_b"]).reshape(B * S, H)
        h = jnp.dot(h, p["w1"], precision=hp) + p["b1"]
        h = _gelu_tanh(h)
        h = h * stoch["drop_keep"][l]
        h = jnp.dot(h, p["w2"], precision=hp) + p["b2"]
        h = h.reshape(B, S, H)
        h = h + h * stoch["dp_mlp"][l][:, None, None]
        x = _layer_norm_ref(res + h, p["ln_mlp_g"], p["ln_mlp_b"])
    return _layer_norm_ref(x, params["ln_g"], params["ln_b"])


# -----------------------------------------------------------------------------
if __name__ == "__main__":
    root = jax.random.PRNGKey(0)
    k_params, k_x, k_stoch, k_unit = jax.random.split(root, 4)

    B, S = 2, 8
    enc = Encoder(k_params)
    x = jax.random.normal(k_x, (B, S, hidden_size), dtype=jnp.float32)

    # --- tight unit check of the fused DropPath + residual + LayerNorm kernel
    res_u = jax.random.normal(k_unit, (B, S, hidden_size), jnp.float32)
    dp_u = jnp.array([0.0, 1.0 / (1.0 - DROP_PATH_PROB)], jnp.float32)
    got = jax.block_until_ready(
        residual_droppath_ln_pallas(res_u, x, dp_u,
                                    enc.params["ln_g"], enc.params["ln_b"]))
    want = _layer_norm_ref(res_u + x * (1.0 + dp_u)[:, None, None],
                           enc.params["ln_g"], enc.params["ln_b"])
    assert bool(jnp.allclose(got, want, atol=1e-4, rtol=1e-4)), \
        "drop_path + residual + LayerNorm kernel mismatch"

    # --- eval mode (deterministic: DropPath / Dropout inactive) --------------
    enc.training = False
    out_eval = jax.block_until_ready(enc(x))
    ref_eval = encoder_forward_ref(enc.params, x,
                                   make_stochastic(k_stoch, B, B * S, training=False))
    assert out_eval.shape == x.shape and out_eval.dtype == x.dtype
    rel = float(jnp.linalg.norm(out_eval - ref_eval) / jnp.linalg.norm(ref_eval))
    assert rel < 5e-2, f"eval-mode mismatch, rel err {rel}"

    # --- training mode (stochastic depth + dropout, explicit key) ------------
    enc.training = True
    out_train = jax.block_until_ready(enc(x, key=k_stoch))
    ref_train = encoder_forward_ref(enc.params, x,
                                    make_stochastic(k_stoch, B, B * S, training=True))
    rel_t = float(jnp.linalg.norm(out_train - ref_train) / jnp.linalg.norm(ref_train))
    assert rel_t < 5e-2, f"train-mode mismatch, rel err {rel_t}"

    print("KERNEL_OK")
</pallas_src>

<mosaic_0001>
module attributes {stable_mosaic.version = 11 : i64} {
  func.func @_res_dp_ln_kernel(%arg0: i32, %arg1: memref<2xf32, #tpu.memory_space<smem>>, %arg2: memref<1x8x768xf32, #tpu.memory_space<vmem>>, %arg3: memref<1x8x768xf32, #tpu.memory_space<vmem>>, %arg4: memref<1x768xf32, #tpu.memory_space<vmem>>, %arg5: memref<1x768xf32, #tpu.memory_space<vmem>>, %arg6: memref<1x8x768xf32, #tpu.memory_space<vmem>>) attributes {dimension_semantics = [#tpu.dimension_semantics<parallel>], iteration_bounds = array<i64: 2>, scalar_prefetch = 1 : i64, scratch_operands = 0 : i64, tpu.core_type = #tpu.core_type<tc>, window_params = [{transform_indices = @transform_0, window_bounds = array<i64: 1, 8, 768>}, {transform_indices = @transform_1, window_bounds = array<i64: 1, 8, 768>}, {pipeline_mode = #tpu.pipeline_mode<synchronous>, transform_indices = @transform_2, window_bounds = array<i64: 1, 768>}, {pipeline_mode = #tpu.pipeline_mode<synchronous>, transform_indices = @transform_3, window_bounds = array<i64: 1, 768>}, {transform_indices = @transform_4, window_bounds = array<i64: 1, 8, 768>}]} {
    %0 = arith.index_cast %arg0 : i32 to index
    %1 = memref.load %arg1[%0] : memref<2xf32, #tpu.memory_space<smem>>
    %cst = arith.constant 1.000000e+00 : f32
    %2 = arith.addf %cst, %1 : f32
    %c0 = arith.constant 0 : index
    %c0_0 = arith.constant 0 : index
    %c0_1 = arith.constant 0 : index
    %3 = vector.load %arg2[%c0, %c0_0, %c0_1] : memref<1x8x768xf32, #tpu.memory_space<vmem>>, vector<1x8x768xf32>
    %c0_2 = arith.constant 0 : index
    %c0_3 = arith.constant 0 : index
    %c0_4 = arith.constant 0 : index
    %4 = vector.load %arg3[%c0_2, %c0_3, %c0_4] : memref<1x8x768xf32, #tpu.memory_space<vmem>>, vector<1x8x768xf32>
    %5 = vector.broadcast %2 : f32 to vector<1x8x768xf32>
    %6 = arith.mulf %4, %5 : vector<1x8x768xf32>
    %7 = arith.addf %3, %6 : vector<1x8x768xf32>
    %cst_5 = arith.constant dense<0.000000e+00> : vector<1x8xf32>
    %8 = vector.multi_reduction <add>, %7, %cst_5 [2] : vector<1x8x768xf32> to vector<1x8xf32>
    %9 = vector.shape_cast %8 : vector<1x8xf32> to vector<1x8x1xf32>
    %cst_6 = arith.constant 7.680000e+02 : f32
    %10 = vector.broadcast %cst_6 : f32 to vector<1x8x1xf32>
    %11 = arith.divf %9, %10 : vector<1x8x1xf32>
    %12 = vector.broadcast %11 : vector<1x8x1xf32> to vector<1x8x768xf32>
    %13 = arith.subf %7, %12 : vector<1x8x768xf32>
    %14 = arith.mulf %13, %13 : vector<1x8x768xf32>
    %cst_7 = arith.constant dense<0.000000e+00> : vector<1x8xf32>
    %15 = vector.multi_reduction <add>, %14, %cst_7 [2] : vector<1x8x768xf32> to vector<1x8xf32>
    %16 = vector.shape_cast %15 : vector<1x8xf32> to vector<1x8x1xf32>
    %cst_8 = arith.constant 7.680000e+02 : f32
    %17 = vector.broadcast %cst_8 : f32 to vector<1x8x1xf32>
    %18 = arith.divf %16, %17 : vector<1x8x1xf32>
    %cst_9 = arith.constant 9.99999997E-7 : f32
    %19 = vector.broadcast %cst_9 : f32 to vector<1x8x1xf32>
    %20 = arith.addf %18, %19 : vector<1x8x1xf32>
    %21 = math.rsqrt %20 : vector<1x8x1xf32>
    %22 = vector.broadcast %21 : vector<1x8x1xf32> to vector<1x8x768xf32>
    %23 = arith.mulf %13, %22 : vector<1x8x768xf32>
    %c0_10 = arith.constant 0 : index
    %c0_11 = arith.constant 0 : index
    %24 = vector.load %arg4[%c0_10, %c0_11] : memref<1x768xf32, #tpu.memory_space<vmem>>, vector<1x768xf32>
    %25 = vector.shape_cast %24 : vector<1x768xf32> to vector<1x1x768xf32>
    %26 = vector.broadcast %25 : vector<1x1x768xf32> to vector<1x8x768xf32>
    %27 = arith.mulf %23, %26 : vector<1x8x768xf32>
    %c0_12 = arith.constant 0 : index
    %c0_13 = arith.constant 0 : index
    %28 = vector.load %arg5[%c0_12, %c0_13] : memref<1x768xf32, #tpu.memory_space<vmem>>, vector<1x768xf32>
    %29 = vector.shape_cast %28 : vector<1x768xf32> to vector<1x1x768xf32>
    %30 = vector.broadcast %29 : vector<1x1x768xf32> to vector<1x8x768xf32>
    %31 = arith.addf %27, %30 : vector<1x8x768xf32>
    %c0_14 = arith.constant 0 : index
    %c0_15 = arith.constant 0 : index
    %c0_16 = arith.constant 0 : index
    %32 = vector.load %arg6[%c0_14, %c0_15, %c0_16] : memref<1x8x768xf32, #tpu.memory_space<vmem>>, vector<1x8x768xf32>
    tpu.vector_store %arg6[%c0_14, %c0_15, %c0_16], %31 {strides = array<i32>} : memref<1x8x768xf32, #tpu.memory_space<vmem>>, vector<1x8x768xf32>,
    return
  }
  func.func @transform_0(%arg0: i32, %arg1: memref<2xf32, #tpu.memory_space<smem>>) -> (i32, i32, i32) {
    %c0_i32 = arith.constant 0 : i32
    %c0_i32_0 = arith.constant 0 : i32
    %c0_i32_1 = arith.constant 0 : i32
    return %arg0, %c0_i32, %c0_i32_0 : i32, i32, i32
  }
  func.func @transform_1(%arg0: i32, %arg1: memref<2xf32, #tpu.memory_space<smem>>) -> (i32, i32, i32) {
    %c0_i32 = arith.constant 0 : i32
    %c0_i32_0 = arith.constant 0 : i32
    %c0_i32_1 = arith.constant 0 : i32
    return %arg0, %c0_i32, %c0_i32_0 : i32, i32, i32
  }
  func.func @transform_2(%arg0: i32, %arg1: memref<2xf32, #tpu.memory_space<smem>>) -> (i32, i32) {
    %c0_i32 = arith.constant 0 : i32
    %c0_i32_0 = arith.constant 0 : i32
    %c0_i32_1 = arith.constant 0 : i32
    return %c0_i32, %c0_i32_0 : i32, i32
  }
  func.func @transform_3(%arg0: i32, %arg1: memref<2xf32, #tpu.memory_space<smem>>) -> (i32, i32) {
    %c0_i32 = arith.constant 0 : i32
    %c0_i32_0 = arith.constant 0 : i32
    %c0_i32_1 = arith.constant 0 : i32
    return %c0_i32, %c0_i32_0 : i32, i32
  }
  func.func @transform_4(%arg0: i32, %arg1: memref<2xf32, #tpu.memory_space<smem>>) -> (i32, i32, i32) {
    %c0_i32 = arith.constant 0 : i32
    %c0_i32_0 = arith.constant 0 : i32
    %c0_i32_1 = arith.constant 0 : i32
    return %arg0, %c0_i32, %c0_i32_0 : i32, i32, i32
  }
}

</mosaic_0001>

<bundles_post_ra>
// kernel: tpu_custom_call.1
= control target key start
LH: loop header
LB: loop body
LE: loop exit
PB: predicated region body
PF: predicated region fallthrough
CT: control target
= control target key end

     0   :  { %s780_s18 = smov [#allocation3]   ;;  %s1058_s0 = inlined_call_operand.hbm [shape: f32[2], index: 0, kind: input, shape index: {}]   ;;  %s1059_s1 = inlined_call_operand.hbm [shape: f32[2,8,768], index: 1, kind: input, shape index: {}]   ;;  %s1060_s2 = inlined_call_operand.hbm [shape: f32[2,8,768], index: 2, kind: input, shape index: {}]   ;;  %s1061_s3 = inlined_call_operand.hbm [shape: f32[1,768], index: 3, kind: input, shape index: {}]   ;;  %s1062_s4 = inlined_call_operand.vmem [shape: f32[1,768], index: 4, kind: input, shape index: {}]   ;;  %s1063_s5 = inlined_call_operand.hbm [shape: f32[2,8,768], index: 5, kind: output, shape index: {}]  }
   0x1   :  { %11 = dma.hbm_to_smem %s1058_s0, 16, %s780_s18, [#allocation2] }
   0x2   :  { %746 = dma.done.wait [#allocation2], 16 }
   0x3   :  { %747 = vsyncadd [#allocation2], 4294967280 }
   0x4   :  { %13 = sfence }
   0x5   :  { %14 = vsyncpa [#allocation5], 0 }
   0x6   :  { %16 = vsyncpa [#allocation5 + $0x1], 0 }
   0x7   :  { %17 = vsyncpa [#allocation8], 0 }
   0x8   :  { %19 = vsyncpa [#allocation8 + $0x1], 0 }
   0x9   :  { %20 = vsyncpa [#allocation6], 0 }
   0xa   :  { %22 = vsyncpa [#allocation6 + $0x1], 0  ;;  %s818_s21 = smov 0   ;;  %s820_s22 = smov 0  }
   0xb   :  { %s822_s23 = smov 0   ;;  %s824_s24 = smov 0  }
   0xc LB: > { %s839_s0 = sadd.s32 4294967295, %s778_s24   ;;  %s532_s25 = sadd.s32 4294967294, %s778_s24   ;;  %s778_s24 = sphi %s824_s24, %s1087_s24   ;;  %s774_s23 = sphi %s822_s23, %s1086_s23   ;;  %s770_s22 = sphi %s820_s22, %s1085_s22   ;;  %s766_s21 = sphi %s818_s21, %s1084_s21  }
   0xd   : > { %p48_p0 = scmp.ne.s32.totalorder %s770_s22, %s766_s21  ;;  %p1064_p1 = scmp.eq.s32.totalorder %s839_s0, 0 }
   0xe   : > { %p146_p3 = scmp.eq.s32.totalorder %s532_s25, 1  ;;  %p533_p5 = scmp.ge.s32.totalorder %s778_s24, 1 }
   0xf   : > { %p848_p4 = por %p1064_p1, %p48_p0  ;;  %p153_p7 = scmp.lt.s32.totalorder %s778_s24, 3 }
  0x10   : > { %p853_p6 = por %p146_p3, %p48_p0  ;;  %s781_s29 = smov [#allocation9]  }
  0x11   : > { %s1068_s26 = scalar_select %p848_p4, 1, 0 }
  0x12   : > { %s1069_s27 = scalar_select %p853_p6, 1, 0 }
  0x13   : > { %p858_p8 = pnand %p533_p5, %p153_p7  ;;  %s166_s30 = sshll.u32 %s781_s29, 4  ;;  %s167_s30 = int_to_ptr.vmem [resolvable:$true] %s166_s30 }
  0x14   : > { %s866_s6 = sadd.s32 1, %s778_s24   ;;  %s35_s10 = sadd.s32 1, %s774_s23 }
  0x15   : > { %s1070_s28 = scalar_select %p858_p8, 1, 0 }
  0x16   : > { %p559_p10 = pneg %p858_p8  ;;  %s32_s8 = ssub.s32 %s778_s24, %s866_s6 }
  0x17   : > { %p876_p12 = scmp.eq.s32.totalorder %s32_s8, 0  ;;  %p42_p13 = scmp.ne.s32.totalorder %s774_s23, %s770_s22 }
  0x18   : > { %p870_p11 = pnand %p559_p10, %p1064_p1  ;;  %s633_s11 = scalar_lea.vmem %s167_s30, 96 }
  0x19   : > { %p634_p3 = scmp.ne.s32.totalorder %s167_s30, %s633_s11  ;;  %p641_p9 = scmp.lt.s32.totalorder %s167_s30, %s167_s30 }
  0x1a   : > { %p624_p0 = pneg %p870_p11  ;;  %p642_p2 = scmp.lt.s32.totalorder %s633_s11, %s633_s11 }
  0x1c   : > { %p636_p5 = pnand %p634_p3, %p624_p0  ;;  %p643_p10 = por %p642_p2, %p641_p9 }
  0x1e   : > { %p637_p7 = pneg %p636_p5 }
  0x20   : > { %p644_p1 = pnand %p643_p10, %p637_p7 }
  0x22   : > { %647 = shalt.err (!%p644_p1)
}
  0x23   : > { %562 = dma.hbm_to_vmem [thread:$0]  (!%p870_p11), %s1061_s3, 96, %s167_s30, [#allocation8]  }
  0x24   : > { %s893_s14 = scalar_select %p876_p12, %s774_s23, %s35_s10  }
  0x25   : > { %p43_p1 = scmp.eq.s32.totalorder %s778_s24, 0  ;;  %p1073_p2 = scmp.eq.s32.totalorder %s839_s0, 1 }
  0x26   : > { %p575_p0 = scmp.lt.s32.totalorder %s778_s24, 2  ;;  %s180_s16 = sand.u32 1, %s774_s23  }
  0x27   : > { %p901_p9 = por %p1073_p2, %p42_p13  ;;  %p44_p3 = por %p43_p1, %p42_p13 }
  0x28   : > { %s910_s17 = smul.u32 48, %s180_s16  ;;  %s181_s9 = scalar_lea.sflag [#allocation5], %s180_s16 }
  0x29   : > { %s1074_s15 = scalar_select %p901_p9, 1, 0 }
  0x2a   : > { %s544_s19 = smul.u32 768, %s778_s24  ;;  %p914_p11 = pnand %p575_p0, %p44_p3 }
  0x2b   : > { %s184_s7 = scalar_lea.vmem [#allocation4], %s910_s17  ;;  %s653_s13 = scalar_lea.hbm %s1059_s1, 1536 }
  0x2c   : > { %s923_s30 = scalar_lea.hbm %s1059_s1, %s544_s19  ;;  %s192_s8 = sshll.u32 %s184_s7, 4  ;;  %s193_s8 = int_to_ptr.vmem [resolvable:$true] %s192_s8 }
  0x2d   : > { %s648_s10 = scalar_lea.hbm %s923_s30, 768  ;;  %p650_p13 = pneg %p914_p11 }
  0x2e   : > { %p649_p12 = scmp.ne.s32.totalorder %s923_s30, %s648_s10  ;;  %p654_p10 = scmp.lt.s32.totalorder %s923_s30, %s1059_s1 }
  0x2f   : > { %p655_p1 = scmp.lt.s32.totalorder %s653_s13, %s648_s10 }
  0x30   : > { %p651_p5 = pnand %p650_p13, %p649_p12 }
  0x31   : > { %p656_p2 = por %p655_p1, %p654_p10 }
  0x32   : > { %p652_p7 = pneg %p651_p5 }
  0x34   : > { %p657_p0 = pnand %p656_p2, %p652_p7 }
  0x36   : > { %660 = shalt.err (!%p657_p0)
}
  0x37   : > { %s661_s16 = scalar_lea.vmem %s193_s8, 768  ;;  %s782_s7 = smov [#allocation4]  }
  0x38   : > { %p662_p3 = scmp.ne.s32.totalorder %s193_s8, %s661_s16  ;;  %s666_s18 = sshll.u32 %s782_s7, 4  ;;  %s667_s18 = int_to_ptr.vmem [resolvable:$false] %s666_s18 }
  0x39   : > { %s668_s11 = scalar_lea.vmem %s667_s18, 1536  ;;  %p669_p5 = scmp.lt.s32.totalorder %s193_s8, %s667_s18 }
  0x3a   : > { %p664_p6 = pnand %p662_p3, %p650_p13  ;;  %p670_p9 = scmp.lt.s32.totalorder %s668_s11, %s661_s16 }
  0x3c   : > { %p665_p12 = pneg %p664_p6  ;;  %p671_p4 = por %p670_p9, %p669_p5 }
  0x3e   : > { %p672_p8 = pnand %p671_p4, %p665_p12 }
  0x40   : > { %675 = shalt.err (!%p672_p8)
}
  0x41   : > { %566 = dma.hbm_to_vmem [thread:$0]  (!%p914_p11), %s923_s30, 768, %s193_s8, %s181_s9  }
  0x42   : > { %s951_s13 = scalar_lea.hbm %s1060_s2, %s544_s19  ;;  %s203_s18 = scalar_lea.vmem [#allocation7], %s910_s17 }
  0x43   : > { %s211_s25 = sshll.u32 %s203_s18, 4  ;;  %s1076_s29 = sand.u32 1, %s778_s24   ;;  %s212_s25 = int_to_ptr.vmem [resolvable:$true] %s211_s25 }
  0x44   : > { %s200_s16 = scalar_lea.sflag [#allocation8], %s1076_s29  ;;  %s676_s7 = scalar_lea.hbm %s951_s13, 768 }
  0x45   : > { %p677_p4 = scmp.ne.s32.totalorder %s951_s13, %s676_s7  ;;  %s681_s9 = scalar_lea.hbm %s1060_s2, 1536 }
  0x46   : > { %p682_p9 = scmp.lt.s32.totalorder %s951_s13, %s1060_s2  ;;  %p683_p7 = scmp.lt.s32.totalorder %s681_s9, %s676_s7 }
  0x47   : > { %p679_p6 = pnand %p677_p4, %p650_p13 }
  0x48   : > { %p684_p10 = por %p683_p7, %p682_p9 }
  0x49   : > { %p680_p8 = pneg %p679_p6 }
  0x4b   : > { %p685_p1 = pnand %p684_p10, %p680_p8 }
  0x4d   : > { %688 = shalt.err (!%p685_p1)
}
  0x4e   : > { %s689_s17 = scalar_lea.vmem %s212_s25, 768  ;;  %s783_s10 = smov [#allocation7]  }
  0x4f   : > { %p690_p2 = scmp.ne.s32.totalorder %s212_s25, %s689_s17  ;;  %s694_s12 = sshll.u32 %s783_s10, 4  ;;  %s695_s12 = int_to_ptr.vmem [resolvable:$false] %s694_s12 }
  0x50   : > { %s696_s18 = scalar_lea.vmem %s695_s12, 1536  ;;  %p697_p12 = scmp.lt.s32.totalorder %s212_s25, %s695_s12 }
  0x51   : > { %p692_p0 = pnand %p690_p2, %p650_p13  ;;  %p698_p5 = scmp.lt.s32.totalorder %s696_s18, %s689_s17 }
  0x53   : > { %p693_p3 = pneg %p692_p0  ;;  %p699_p4 = por %p698_p5, %p697_p12 }
  0x55   : > { %p700_p6 = pnand %p699_p4, %p693_p3 }
  0x57   : > { %703 = shalt.err (!%p700_p6)
}
  0x58   : > { %569 = dma.hbm_to_vmem [thread:$0]  (!%p914_p11), %s951_s13, 768, %s212_s25, %s200_s16  }
  0x59   : > { %p1077_p8 = scmp.ne.s32.totalorder %s1070_s28, 0 }
  0x5a   : > { %s977_s29 = sand.u32 (!%p1077_p8), 1, %s770_s22   ;;  %p1078_p13 = scmp.ne.s32.totalorder (!%p1077_p8), %s1068_s26, 0 }
  0x5b   : > { %220 = sbr.rel (%p1077_p8) target bundleno = 457 (0x1c9), region = 36  ;;  %s223_s30 = scalar_lea.sflag (!%p1077_p8), [#allocation5], %s977_s29 }
  0x5c   : > { %s980_s7 = smul.u32 (!%p1077_p8), 48, %s977_s29 }
  0x5e   : > { %s984_s8 = scalar_lea.vmem (!%p1077_p8), [#allocation4], %s980_s7 }
  0x60   : > { %749 = dma.done.wait (%p1078_p13), %s223_s30, 768  }
  0x61   : > { %751 = vsyncadd (%p1078_p13), %s223_s30, 4294966528  ;;  %s231_s28 = sand.u32 1, %s839_s0   ;;  %s235_s13 = scalar_lea.vmem [#allocation7], %s980_s7 }
  0x62   : > { %s232_s20 = scalar_lea.sflag [#allocation8], %s231_s28 }
  0x63   : > { %753 = dma.done.wait (%p1078_p13), %s232_s20, 768  }
  0x64   : > { %755 = vsyncadd (%p1078_p13), %s232_s20, 4294966528  ;;  %p1079_p11 = scmp.eq.s32.totalorder %s839_s0, 0 }
  0x66   : > { %757 = dma.done.wait (%p1079_p11), [#allocation8], 96   ;;  %p1080_p9 = pmov %p1079_p11 }
  0x67   : > { %s269_s25 = sld [smem:[#allocation3 + %s839_s0]]  ;;  %v271_v0 = vld [vmem:[%s984_s8] sm:$0xff]  ;;  %v272_v1 = vld [vmem:[%s984_s8 + $0x8] sm:$0xff]  ;;  %v273_v2 = vld [vmem:[%s984_s8 + $0x10] sm:$0xff]  ;;  %v335_v52 = vlaneseq  ;;  %s548_s19 = smul.u32 768, %s839_s0 }
  0x68   : > { %759 = vsyncadd (%p1080_p9), [#allocation8], 4294967200  ;;  %v277_v3 = vld [vmem:[%s235_s13] sm:$0xff]  ;;  %v278_v4 = vld [vmem:[%s235_s13 + $0x8] sm:$0xff]  ;;  %s268_s11 = scalar_lea.vmem [#allocation10], %s980_s7  ;;  %s416_s18 = scalar_lea.sflag [#allocation6], %s977_s29 }
  0x69   : > { %v279_v5 = vld [vmem:[%s235_s13 + $0x10] sm:$0xff]  ;;  %v280_v7 = vld [vmem:[%s235_s13 + $0x18] sm:$0xff]  ;;  %v281_v8 = vld [vmem:[%s235_s13 + $0x20] sm:$0xff]  ;;  %v336_v53 = vshrl.u32 %v335_v52, 7  ;;  %s430_s17 = sshll.u32 %s268_s11, 4  ;;  %s1015_s0 = scalar_lea.hbm %s1063_s5, %s548_s19  ;;  %s1017_s17 = int_to_ptr.vmem [resolvable:$true] %s430_s17 }
  0x6a   : > { %v274_v12 = vld [vmem:[%s984_s8 + $0x18] sm:$0xff]  ;;  %v282_v13 = vld [vmem:[%s235_s13 + $0x28] sm:$0xff]  ;;  %v275_v19 = vld [vmem:[%s984_s8 + $0x20] sm:$0xff]  ;;  %s704_s7 = scalar_lea.vmem %s1017_s17, 768  ;;  %p1081_p10 = scmp.ne.s32.totalorder %s1074_s15, 0 }
  0x6b   : > { %v276_v23 = vld [vmem:[%s984_s8 + $0x28] sm:$0xff]  ;;  %v337_v54 = vsub.s32 0, %v336_v53  ;;  %v341_v55 = vsub.s32 1, %v336_v53  ;;  %v333_v56 = vld [vmem:[#allocation9] sm:$0x3f]  ;;  %v345_v57 = vsub.s32 2, %v336_v53  ;;  %p705_p7 = scmp.ne.s32.totalorder %s1017_s17, %s704_s7 }
  0x6c   : > { %v349_v58 = vsub.s32 3, %v336_v53  ;;  %v353_v59 = vsub.s32 4, %v336_v53  ;;  %v357_v60 = vsub.s32 5, %v336_v53  ;;  %v371_v61 = vld [vmem:[%s1062_s4] sm:$0x3f]  ;;  %s784_s30 = smov [#allocation10]  }
  0x6d   : > { %s270_s16 = sadd.f32 1.0, %s269_s25  ;;  %v338_v62 = vrot.slane %v333_v56, %v337_v54  ;;  %v342_v63 = vrot.slane %v333_v56, %v341_v55  ;;  %p706_p1 = pnand %p705_p7, %p1081_p10 }
  0x6e   : > { %s708_s8 = sshll.u32 %s784_s30, 4  ;;  %s709_s8 = int_to_ptr.vmem [resolvable:$false] %s708_s8 }
  0x6f   : > { %v283_v6 = vstv %s270_s16  ;;  %p707_p2 = pneg %p706_p1  ;;  %s710_s28 = scalar_lea.vmem %s709_s8, 1536 }
  0x70   : > { %v284_v9 = vmul.f32 %v283_v6, %v277_v3  ;;  %v285_v10 = vmul.f32 %v283_v6, %v278_v4  ;;  %v286_v11 = vmul.f32 %v283_v6, %v279_v5  ;;  %v287_v14 = vmul.f32 %v283_v6, %v280_v7  ;;  %p711_p0 = scmp.lt.s32.totalorder %s1017_s17, %s709_s8  ;;  %p712_p3 = scmp.lt.s32.totalorder %s710_s28, %s704_s7 }
  0x71   : > { %v288_v15 = vmul.f32 %v283_v6, %v281_v8  ;;  %v289_v20 = vmul.f32 %v283_v6, %v282_v13  ;;  %v358_v3 = vrot.slane %v333_v56, %v357_v60  ;;  %v376_v5 = vrot.slane %v371_v61, %v337_v54 }
  0x72   : > { %v290_v16 = vadd.f32 %v284_v9, %v271_v0  ;;  %v291_v17 = vadd.f32 %v285_v10, %v272_v1  ;;  %v292_v18 = vadd.f32 %v286_v11, %v273_v2  ;;  %v293_v21 = vadd.f32 %v287_v14, %v274_v12  ;;  %p713_p12 = por %p712_p3, %p711_p0 }
  0x73   : > { %v294_v24 = vadd.f32 %v288_v15, %v275_v19  ;;  %v295_v26 = vadd.f32 %v289_v20, %v276_v23  ;;  %v346_v0 = vrot.slane %v333_v56, %v345_v57  ;;  %v350_v1 = vrot.slane %v333_v56, %v349_v58 }
  0x74   : > { %v296_v22 = vadd.f32 %v291_v17, %v290_v16  ;;  %v354_v2 = vrot.slane %v333_v56, %v353_v59  ;;  %v380_v6 = vrot.slane %v371_v61, %v341_v55  ;;  %v384_v7 = vrot.slane %v371_v61, %v345_v57  ;;  %p714_p5 = pnand %p713_p12, %p707_p2 }
  0x75   : > { %v388_v8 = vrot.slane %v371_v61, %v349_v58  ;;  %v392_v15 = vrot.slane %v371_v61, %v353_v59 }
  0x76   : > { %v297_v25 = vadd.f32 %v296_v22, %v292_v18 }
  0x78   : > { %v298_v27 = vadd.f32 %v297_v25, %v293_v21 }
  0x7a   : > { %v299_v28 = vadd.f32 %v298_v27, %v294_v24 }
  0x7c   : > { %v300_v29 = vadd.f32 %v299_v28, %v295_v26 }
  0x7e   : > { %301 = vadd.xlane.f32.xlu0 %v300_v29 }
 0x107   : > { %v302_v30 = vpop.xlane.xlu0 %301 }
 0x108   : > { %v304_v31 = vmul.f32 0.0013020834, %v302_v30 }
 0x10a   : > { %v305_v32 = vsub.f32 %v290_v16, %v304_v31  ;;  %v306_v33 = vsub.f32 %v291_v17, %v304_v31  ;;  %v307_v34 = vsub.f32 %v292_v18, %v304_v31  ;;  %v308_v35 = vsub.f32 %v293_v21, %v304_v31 }
 0x10b   : > { %v309_v38 = vsub.f32 %v294_v24, %v304_v31  ;;  %v310_v41 = vsub.f32 %v295_v26, %v304_v31  ;;  %v396_v16 = vrot.slane %v371_v61, %v357_v60 }
 0x10c   : > { %v311_v36 = vmul.f32 %v305_v32, %v305_v32  ;;  %v312_v37 = vmul.f32 %v306_v33, %v306_v33  ;;  %v313_v39 = vmul.f32 %v307_v34, %v307_v34  ;;  %v314_v42 = vmul.f32 %v308_v35, %v308_v35 }
 0x10d   : > { %v315_v44 = vmul.f32 %v309_v38, %v309_v38  ;;  %v316_v46 = vmul.f32 %v310_v41, %v310_v41 }
 0x10e   : > { %v317_v40 = vadd.f32 %v312_v37, %v311_v36 }
 0x110   : > { %v318_v43 = vadd.f32 %v317_v40, %v313_v39 }
 0x112   : > { %v319_v45 = vadd.f32 %v318_v43, %v314_v42 }
 0x114   : > { %v320_v47 = vadd.f32 %v319_v45, %v315_v44 }
 0x116   : > { %v321_v48 = vadd.f32 %v320_v47, %v316_v46 }
 0x118   : > { %322 = vadd.xlane.f32.xlu0 %v321_v48 }
 0x1a1   : > { %v323_v49 = vpop.xlane.xlu0 %322 }
 0x1a2   : > { %v324_v50 = vmul.f32 0.0013020834, %v323_v49 }
 0x1a4   : > { %v325_v51 = vadd.f32 1e-06, %v324_v50 }
 0x1a6   : > { %612 = vrsqrt.f32 %v325_v51 }
 0x1b3   : > { %v613_v4 = vpop.eup %612 }
 0x1b4   : > { %v327_v9 = vmul.f32 %v613_v4, %v305_v32  ;;  %v328_v10 = vmul.f32 %v613_v4, %v306_v33  ;;  %v329_v11 = vmul.f32 %v613_v4, %v307_v34  ;;  %v330_v12 = vmul.f32 %v613_v4, %v308_v35 }
 0x1b5   : > { %v331_v13 = vmul.f32 %v613_v4, %v309_v38  ;;  %v332_v14 = vmul.f32 %v613_v4, %v310_v41 }
 0x1b6   : > { %v365_v17 = vmul.f32 %v338_v62, %v327_v9  ;;  %v366_v18 = vmul.f32 %v342_v63, %v328_v10  ;;  %v367_v19 = vmul.f32 %v346_v0, %v329_v11  ;;  %v368_v20 = vmul.f32 %v350_v1, %v330_v12 }
 0x1b7   : > { %v369_v21 = vmul.f32 %v354_v2, %v331_v13  ;;  %v370_v22 = vmul.f32 %v358_v3, %v332_v14 }
 0x1b8   : > { %v403_v23 = vadd.f32 %v376_v5, %v365_v17  ;;  %v404_v24 = vadd.f32 %v380_v6, %v366_v18  ;;  %v405_v25 = vadd.f32 %v384_v7, %v367_v19  ;;  %v406_v26 = vadd.f32 %v388_v8, %v368_v20 }
 0x1b9   : > { %v407_v27 = vadd.f32 %v392_v15, %v369_v21  ;;  %v408_v28 = vadd.f32 %v396_v16, %v370_v22 }
 0x1ba   : > { %409 = vst [vmem:[%s268_s11] sm:$0xff] %v403_v23  ;;  %410 = vst [vmem:[%s268_s11 + $0x8] sm:$0xff] %v404_v24 }
 0x1bb   : > { %411 = vst [vmem:[%s268_s11 + $0x10] sm:$0xff] %v405_v25  ;;  %412 = vst [vmem:[%s268_s11 + $0x18] sm:$0xff] %v406_v26 }
 0x1bc   : > { %413 = vst [vmem:[%s268_s11 + $0x20] sm:$0xff] %v407_v27  ;;  %414 = vst [vmem:[%s268_s11 + $0x28] sm:$0xff] %v408_v28 }
 0x1bd   : > { %717 = shalt.err (!%p714_p5)
}
 0x1be   : > { %s718_s20 = scalar_lea.hbm %s1015_s0, 768  ;;  %s722_s25 = scalar_lea.hbm %s1063_s5, 1536 }
 0x1bf   : > { %p719_p4 = scmp.ne.s32.totalorder %s1015_s0, %s718_s20  ;;  %p723_p13 = scmp.lt.s32.totalorder %s1015_s0, %s1063_s5 }
 0x1c0   : > { %p724_p11 = scmp.lt.s32.totalorder %s722_s25, %s718_s20 }
 0x1c1   : > { %p720_p6 = pnand %p719_p4, %p1081_p10 }
 0x1c2   : > { %p725_p9 = por %p724_p11, %p723_p13 }
 0x1c3   : > { %p721_p8 = pneg %p720_p6 }
 0x1c5   : > { %p726_p7 = pnand %p725_p9, %p721_p8 }
 0x1c7   : > { %729 = shalt.err (!%p726_p7)
}
 0x1c8   : > { %557 = dma.vmem_to_hbm [thread:$0]  (%p1081_p10), %s1017_s17, 768, %s1015_s0, %s416_s18  }
 0x1c9 PF: > { %s442_s9 = sand.u32 1, %s766_s21   ;;  %p1082_p1 = scmp.ne.s32.totalorder %s1069_s27, 0 }
 0x1ca   : > { %p1083_p2 = scmp.ge.s32.totalorder %s778_s24, 2  ;;  %s443_s19 = scalar_lea.sflag [#allocation6], %s442_s9 }
 0x1cc   : > { %p571_p0 = pnand %p1083_p2, %p1082_p1 }
 0x1ce   : > { %p572_p3 = pneg %p571_p0 }
 0x1d0   : > { %761 = dma.done.wait (%p572_p3), %s443_s19, 768  }
 0x1d1   : > { %763 = vsyncadd (%p572_p3), %s443_s19, 4294966528  ;;  %p25_p12 = scmp.ge.s32.totalorder %s866_s6, 4   ;;  %s1084_s21 = smov %s770_s22 }
 0x1d2   : > { %s1085_s22 = smov %s774_s23  ;;  %s1086_s23 = smov %s893_s14 }
 0x1d3   : > { %s1087_s24 = smov %s866_s6  ;;  %27 = sbr.rel (!%p25_p12) target bundleno = 12 (0xc), region = 98 }
 0x1d8   :  { %448 = vsyncpa [#allocation5], 1 }
 0x1d9   :  { %450 = vsyncpa [#allocation5 + $0x1], 1 }
 0x1da   :  { %451 = vsyncpa [#allocation8], 1 }
 0x1db   :  { %453 = vsyncpa [#allocation8 + $0x1], 1 }
 0x1dc   :  { %454 = vsyncpa [#allocation6], 1 }
 0x1dd   :  { %456 = vsyncpa [#allocation6 + $0x1], 1 }

</bundles_post_ra>
